<compile_context>
chip_gen: v7x
topology: tpu7x:2x2x1
jax: 0.10.0
libtpu: 0.0.40
codegen_flags: <defaults>
</compile_context>

<pallas_src>
import functools
import math

import numpy as np
import jax
import jax.numpy as jnp
from jax import lax
from jax.experimental import pallas as pl
from jax.experimental.pallas import tpu as pltpu

OUT_HW = 64          # AdaptiveAvgPool2d target size
OUT_R = OUT_HW // 2  # 32 packed output rows  (two (64,) rows per packed row)
LANES = 2 * OUT_HW   # 128 packed output lanes


def _adaptive_pool_matrix(in_size: int, out_size: int) -> np.ndarray:
    """Row-stochastic matrix (out_size, in_size) reproducing PyTorch
    AdaptiveAvgPool bin semantics exactly."""
    M = np.zeros((out_size, in_size), dtype=np.float32)
    for i in range(out_size):
        start = (i * in_size) // out_size
        end = -((-(i + 1) * in_size) // out_size)  # ceil((i+1)*in/out)
        M[i, start:end] = 1.0 / (end - start)
    return M


@functools.lru_cache(maxsize=None)
def _pool_constants(h: int, w: int):
    """Cached host-side constants; constant-folded under jit."""
    L = _adaptive_pool_matrix(h, OUT_HW)                 # (64, H)
    R = _adaptive_pool_matrix(w, OUT_HW)                 # (64, W)
    LC = np.concatenate([L[0::2], L[1::2]], axis=0)      # (64, H): [even; odd]
    RT2 = np.concatenate([R.T, R.T], axis=1)             # (W, 128) = [R^T|R^T]
    return LC, RT2


@functools.lru_cache(maxsize=None)
def _chip_profile():
    """(vmem_limit_bytes or None, block_budget_bytes, num_tensorcores).

    Best-effort per-generation sizing from the device kind:
      v5*/v6*: 128 MiB physical VMEM, 1 TC  -> 96 MiB limit, 28 MiB of blocks
      v7*:      64 MiB physical VMEM, 2 TCs -> 48 MiB limit, 16 MiB of blocks
      unknown: keep compiler defaults, conservative 8 MiB of blocks
    """
    try:
        kind = jax.devices()[0].device_kind.lower()
    except Exception:
        kind = ""
    if "v7" in kind:
        return 48 << 20, 16 << 20, 2
    if "v6" in kind or "v5" in kind:
        return 96 << 20, 28 << 20, 1
    return None, 8 << 20, 1


def _pick_nb(n: int, h: int, w: int, block_budget: int) -> int:
    """Samples per grid step, governed by the per-generation VMEM budget.

    Counts the lane-padded footprint of the double-buffered x block, the tmp
    scratch (with headroom for MXU-result staging) and the double-buffered
    packed output block; resident pooling constants are subtracted first.
    """
    w_pad = -(-w // 128) * 128
    h_lane_pad = -(-h // 128) * 128
    w_sub_pad = -(-w // 8) * 8
    per_sample = 4 * (2 * h * w_pad            # x block, 2 buffers, lane-padded
                      + 2 * h * LANES          # tmp scratch + staging headroom
                      + 2 * OUT_R * LANES)     # packed output block, 2 buffers
    const_bytes = 4 * (2 * OUT_HW * h_lane_pad     # LC (double-buffered)
                       + 2 * w_sub_pad * LANES)    # RT2 (double-buffered)
    budget = max(block_budget - const_bytes, per_sample)
    nb = max(1, min(n, budget // per_sample, 4096))
    if nb >= n:
        return int(n)          # single step: block == full array dims
    g = 8 // math.gcd(h, 8)
    nb = max(g, (nb // g) * g)  # align DOWN so (nb*h, w) stays (8, .)-legal
    return int(nb)


def _reshape_kernel(x_ref, lc_ref, rt2_ref, b_ref, o_ref, tmp_ref):
    # x_ref  : (Nb*H, W)     f32 VMEM  Nb samples with their H rows flattened
    # lc_ref : (64, H)       f32 VMEM  [even rows of conv_w*L ; odd rows]
    # rt2_ref: (W, 128)      f32 VMEM  [R^T | R^T]
    # b_ref  : (1,)          f32 SMEM  conv bias
    # o_ref  : (Nb, 32, 128) f32 VMEM  packed: o[n, q, e*64+p] = y[n, 2q+e, p]
    # tmp_ref: (Nb, H, 128)  f32 VMEM  scratch for the W-contraction result
    nb = o_ref.shape[0]
    h = lc_ref.shape[1]

    # Stage 1: W-contraction as ONE flattened, 128-lane-wide MXU matmul.
    tmp_ref[...] = jnp.dot(
        x_ref[...], rt2_ref[...],
        preferred_element_type=jnp.float32).reshape(nb, h, LANES)

    bias = b_ref[0]

    def body(s, carry):
        # Stage 2: H-contraction, one (64,H)@(H,128) MXU matmul per sample;
        # LC is read in place (no per-sample broadcast materialization).
        res = jnp.dot(lc_ref[...], tmp_ref[s],
                      preferred_element_type=jnp.float32)       # (64, 128)
        lane = lax.broadcasted_iota(jnp.int32, (OUT_R, LANES), 1)
        slab = jnp.where(lane < OUT_HW, res[:OUT_R, :], res[OUT_R:, :])
        o_ref[s] = (slab + bias).astype(o_ref.dtype)            # lane-dense
        return carry

    lax.fori_loop(0, nb, body, 0, unroll=bool(nb <= 16))


@jax.jit
def feature_reshape_net(x, conv_weight, conv_bias):
    """x: (N, H, W) float32 -> (N, 1, 64, 64) float32 (NCHW like PyTorch)."""
    n, h, w = x.shape
    lc_np, rt2_np = _pool_constants(h, w)
    vmem_limit, block_budget, cores = _chip_profile()

    nb = _pick_nb(n, h, w, block_budget)
    g = 8 // math.gcd(h, 8)
    steps = -(-n // nb)
    # v7x only: give both TensorCores equal work (even number of grid steps).
    if cores >= 2 and n >= 2 and steps % 2 == 1:
        nb_even = -(-n // (steps + 1))
        nb_even = max(g, -(-nb_even // g) * g)
        if nb_even < n and (-(-n // nb_even)) % 2 == 0:
            nb = nb_even
            steps = -(-n // nb)

    # No jnp.pad: the ragged tail is handled by Pallas's partial last block.
    x2d = x.reshape(n * h, w).astype(jnp.float32)

    # Fold the 1x1-conv weight into the H-pool matrix (one tiny op); only the
    # bias add stays in the kernel.
    lc = jnp.asarray(lc_np) * conv_weight.reshape(()).astype(jnp.float32)
    rt2 = jnp.asarray(rt2_np)
    b = conv_bias.reshape((1,)).astype(jnp.float32)

    flops = (2 * n * h * w * LANES            # flattened W-contraction
             + 2 * n * OUT_HW * h * LANES     # per-sample H-contraction
             + 2 * n * OUT_R * LANES)         # select + bias
    bytes_accessed = 4 * (n * h * w + n * OUT_R * LANES
                          + OUT_HW * h + w * LANES + 1)

    cp_kwargs = dict(dimension_semantics=("parallel",))
    if vmem_limit is not None:
        cp_kwargs["vmem_limit_bytes"] = int(vmem_limit)

    out = pl.pallas_call(
        _reshape_kernel,
        out_shape=jax.ShapeDtypeStruct((n, OUT_R, LANES), jnp.float32),
        grid_spec=pltpu.PrefetchScalarGridSpec(
            num_scalar_prefetch=0,
            grid=(steps,),
            in_specs=[
                pl.BlockSpec((nb * h, w), lambda i: (i, 0)),
                pl.BlockSpec((OUT_HW, h), lambda i: (0, 0)),
                pl.BlockSpec((w, LANES), lambda i: (0, 0)),
                pl.BlockSpec(memory_space=pltpu.MemorySpace.SMEM),
            ],
            out_specs=pl.BlockSpec((nb, OUT_R, LANES), lambda i: (i, 0, 0)),
            scratch_shapes=[pltpu.VMEM((nb, h, LANES), jnp.float32)],
        ),
        compiler_params=pltpu.CompilerParams(**cp_kwargs),
        cost_estimate=pl.CostEstimate(
            flops=flops, transcendentals=0, bytes_accessed=bytes_accessed),
    )(x2d, lc, rt2, b)

    # (N, 32, 128) is the row-major packing of (N, 64, 64): free reshape.
    out = out.reshape(n, OUT_HW, OUT_HW)
    return out[:, None, :, :]                     # (N, 1, 64, 64) NCHW


def _reference(x, conv_weight, conv_bias):
    # Pure-JAX reference with exact adaptive-pool semantics.
    _, h, w = x.shape
    L = jnp.asarray(_adaptive_pool_matrix(h, OUT_HW))
    R = jnp.asarray(_adaptive_pool_matrix(w, OUT_HW))
    y = jnp.einsum("oh,nhw,pw->nop", L, x, R)
    y = conv_weight.reshape(()) * y + conv_bias.reshape(())
    return y[:, None, :, :]


if __name__ == "__main__":
    key = jax.random.PRNGKey(0)
    kx, kw, kb = jax.random.split(key, 3)

    # Small shapes consistent with the module: batch=2, spatial=16x16.
    N, H, W = 2, 16, 16
    x = jax.random.normal(kx, (N, H, W), dtype=jnp.float32)

    # Conv2d(1, 1, kernel_size=1) parameters: weight (1,1,1,1), bias (1,)
    conv_weight = jax.random.normal(kw, (1, 1, 1, 1), dtype=jnp.float32)
    conv_bias = jax.random.normal(kb, (1,), dtype=jnp.float32)

    out = feature_reshape_net(x, conv_weight, conv_bias)
    out = jax.block_until_ready(out)

    assert out.shape == (N, 1, OUT_HW, OUT_HW), out.shape
    ref = _reference(x, conv_weight, conv_bias)
    np.testing.assert_allclose(np.asarray(out), np.asarray(ref),
                               rtol=1e-5, atol=1e-5)

    print("KERNEL_OK")
</pallas_src>

<mosaic_0001>
module attributes {stable_mosaic.version = 11 : i64} {
  func.func @_reshape_kernel(%arg0: i32, %arg1: memref<32x16xf32, #tpu.memory_space<vmem>>, %arg2: memref<64x16xf32, #tpu.memory_space<vmem>>, %arg3: memref<16x128xf32, #tpu.memory_space<vmem>>, %arg4: memref<1xf32, #tpu.memory_space<smem>>, %arg5: memref<2x32x128xf32, #tpu.memory_space<vmem>>, %arg6: memref<2x16x128xf32, #tpu.memory_space<vmem>>) attributes {dimension_semantics = [#tpu.dimension_semantics<parallel>], iteration_bounds = array<i64: 1>, scalar_prefetch = 0 : i64, scratch_operands = 1 : i64, tpu.core_type = #tpu.core_type<tc>, window_params = [{transform_indices = @transform_0, window_bounds = array<i64: 32, 16>}, {pipeline_mode = #tpu.pipeline_mode<synchronous>, transform_indices = @transform_1, window_bounds = array<i64: 64, 16>}, {pipeline_mode = #tpu.pipeline_mode<synchronous>, transform_indices = @transform_2, window_bounds = array<i64: 16, 128>}, {transform_indices = @transform_3, window_bounds = array<i64: 1>}, {transform_indices = @transform_4, window_bounds = array<i64: 2, 32, 128>}]} {
    %c0 = arith.constant 0 : index
    %c0_0 = arith.constant 0 : index
    %0 = vector.load %arg1[%c0, %c0_0] : memref<32x16xf32, #tpu.memory_space<vmem>>, vector<32x16xf32>
    %c0_1 = arith.constant 0 : index
    %c0_2 = arith.constant 0 : index
    %1 = vector.load %arg3[%c0_1, %c0_2] : memref<16x128xf32, #tpu.memory_space<vmem>>, vector<16x128xf32>
    %cst = arith.constant dense<0.000000e+00> : vector<32x128xf32>
    %2 = tpu.matmul %0, %1, %cst {dimension_numbers = #tpu.dot_dimension_numbers<[1], [0], [0], [1], [0, 0, 1, 1], [], []>} : vector<32x16xf32>, vector<16x128xf32>, vector<32x128xf32> -> vector<32x128xf32>
    %3 = vector.shape_cast %2 : vector<32x128xf32> to vector<2x16x128xf32>
    %c0_3 = arith.constant 0 : index
    %c0_4 = arith.constant 0 : index
    %c0_5 = arith.constant 0 : index
    %4 = vector.load %arg6[%c0_3, %c0_4, %c0_5] : memref<2x16x128xf32, #tpu.memory_space<vmem>>, vector<2x16x128xf32>
    tpu.vector_store %arg6[%c0_3, %c0_4, %c0_5], %3 {strides = array<i32>} : memref<2x16x128xf32, #tpu.memory_space<vmem>>, vector<2x16x128xf32>,
    %c0_6 = arith.constant 0 : index
    %5 = memref.load %arg4[%c0_6] : memref<1xf32, #tpu.memory_space<smem>>
    %c0_i32 = arith.constant 0 : i32
    %c0_7 = arith.constant 0 : index
    %c0_8 = arith.constant 0 : index
    %6 = vector.load %arg2[%c0_7, %c0_8] : memref<64x16xf32, #tpu.memory_space<vmem>>, vector<64x16xf32>
    %7 = arith.index_cast %c0_i32 : i32 to index
    %c0_9 = arith.constant 0 : index
    %c0_10 = arith.constant 0 : index
    %8 = vector.load %arg6[%7, %c0_9, %c0_10] : memref<2x16x128xf32, #tpu.memory_space<vmem>>, vector<1x16x128xf32>
    %9 = vector.shape_cast %8 : vector<1x16x128xf32> to vector<16x128xf32>
    %cst_11 = arith.constant dense<0.000000e+00> : vector<64x128xf32>
    %10 = tpu.matmul %6, %9, %cst_11 {dimension_numbers = #tpu.dot_dimension_numbers<[1], [0], [0], [1], [0, 0, 1, 1], [], []>} : vector<64x16xf32>, vector<16x128xf32>, vector<64x128xf32> -> vector<64x128xf32>
    %11 = tpu.iota {dimensions = array<i32: 1>} : vector<32x128xi32>
    %c64_i32 = arith.constant 64 : i32
    %12 = vector.broadcast %c64_i32 : i32 to vector<32x128xi32>
    %13 = arith.cmpi slt, %11, %12 : vector<32x128xi32>
    %14 = vector.extract_strided_slice %10 {offsets = [0, 0], sizes = [32, 128], strides = [1, 1]} : vector<64x128xf32> to vector<32x128xf32>
    %15 = vector.extract_strided_slice %10 {offsets = [32, 0], sizes = [32, 128], strides = [1, 1]} : vector<64x128xf32> to vector<32x128xf32>
    %16 = arith.select %13, %14, %15 : vector<32x128xi1>, vector<32x128xf32>
    %17 = vector.broadcast %5 : f32 to vector<32x128xf32>
    %18 = arith.addf %16, %17 : vector<32x128xf32>
    %19 = arith.index_cast %c0_i32 : i32 to index
    %c0_12 = arith.constant 0 : index
    %c0_13 = arith.constant 0 : index
    %20 = vector.load %arg5[%19, %c0_12, %c0_13] : memref<2x32x128xf32, #tpu.memory_space<vmem>>, vector<1x32x128xf32>
    %21 = vector.shape_cast %20 : vector<1x32x128xf32> to vector<32x128xf32>
    %22 = vector.shape_cast %18 : vector<32x128xf32> to vector<1x32x128xf32>
    tpu.vector_store %arg5[%19, %c0_12, %c0_13], %22 {strides = array<i32>} : memref<2x32x128xf32, #tpu.memory_space<vmem>>, vector<1x32x128xf32>,
    %c1_i32 = arith.constant 1 : i32
    %c0_14 = arith.constant 0 : index
    %c0_15 = arith.constant 0 : index
    %23 = vector.load %arg2[%c0_14, %c0_15] : memref<64x16xf32, #tpu.memory_space<vmem>>, vector<64x16xf32>
    %24 = arith.index_cast %c1_i32 : i32 to index
    %c0_16 = arith.constant 0 : index
    %c0_17 = arith.constant 0 : index
    %25 = vector.load %arg6[%24, %c0_16, %c0_17] : memref<2x16x128xf32, #tpu.memory_space<vmem>>, vector<1x16x128xf32>
    %26 = vector.shape_cast %25 : vector<1x16x128xf32> to vector<16x128xf32>
    %cst_18 = arith.constant dense<0.000000e+00> : vector<64x128xf32>
    %27 = tpu.matmul %23, %26, %cst_18 {dimension_numbers = #tpu.dot_dimension_numbers<[1], [0], [0], [1], [0, 0, 1, 1], [], []>} : vector<64x16xf32>, vector<16x128xf32>, vector<64x128xf32> -> vector<64x128xf32>
    %28 = tpu.iota {dimensions = array<i32: 1>} : vector<32x128xi32>
    %c64_i32_19 = arith.constant 64 : i32
    %29 = vector.broadcast %c64_i32_19 : i32 to vector<32x128xi32>
    %30 = arith.cmpi slt, %28, %29 : vector<32x128xi32>
    %31 = vector.extract_strided_slice %27 {offsets = [0, 0], sizes = [32, 128], strides = [1, 1]} : vector<64x128xf32> to vector<32x128xf32>
    %32 = vector.extract_strided_slice %27 {offsets = [32, 0], sizes = [32, 128], strides = [1, 1]} : vector<64x128xf32> to vector<32x128xf32>
    %33 = arith.select %30, %31, %32 : vector<32x128xi1>, vector<32x128xf32>
    %34 = vector.broadcast %5 : f32 to vector<32x128xf32>
    %35 = arith.addf %33, %34 : vector<32x128xf32>
    %36 = arith.index_cast %c1_i32 : i32 to index
    %c0_20 = arith.constant 0 : index
    %c0_21 = arith.constant 0 : index
    %37 = vector.load %arg5[%36, %c0_20, %c0_21] : memref<2x32x128xf32, #tpu.memory_space<vmem>>, vector<1x32x128xf32>
    %38 = vector.shape_cast %37 : vector<1x32x128xf32> to vector<32x128xf32>
    %39 = vector.shape_cast %35 : vector<32x128xf32> to vector<1x32x128xf32>
    tpu.vector_store %arg5[%36, %c0_20, %c0_21], %39 {strides = array<i32>} : memref<2x32x128xf32, #tpu.memory_space<vmem>>, vector<1x32x128xf32>,
    %c2_i32 = arith.constant 2 : i32
    return
  }
  func.func @transform_0(%arg0: i32) -> (i32, i32) {
    %c0_i32 = arith.constant 0 : i32
    %c0_i32_0 = arith.constant 0 : i32
    return %arg0, %c0_i32 : i32, i32
  }
  func.func @transform_1(%arg0: i32) -> (i32, i32) {
    %c0_i32 = arith.constant 0 : i32
    %c0_i32_0 = arith.constant 0 : i32
    %c0_i32_1 = arith.constant 0 : i32
    return %c0_i32, %c0_i32_0 : i32, i32
  }
  func.func @transform_2(%arg0: i32) -> (i32, i32) {
    %c0_i32 = arith.constant 0 : i32
    %c0_i32_0 = arith.constant 0 : i32
    %c0_i32_1 = arith.constant 0 : i32
    return %c0_i32, %c0_i32_0 : i32, i32
  }
  func.func @transform_3(%arg0: i32) -> i32 {
    %c0_i32 = arith.constant 0 : i32
    %c0_i32_0 = arith.constant 0 : i32
    return %c0_i32 : i32
  }
  func.func @transform_4(%arg0: i32) -> (i32, i32, i32) {
    %c0_i32 = arith.constant 0 : i32
    %c0_i32_0 = arith.constant 0 : i32
    %c0_i32_1 = arith.constant 0 : i32
    return %arg0, %c0_i32, %c0_i32_0 : i32, i32, i32
  }
}

</mosaic_0001>

<bundles_post_ra>
// kernel: feature_reshape_net.1
= control target key start
LH: loop header
LB: loop body
LE: loop exit
PB: predicated region body
PF: predicated region fallthrough
CT: control target
= control target key end

     0   :  { %vm24_vm0 = vcmask 130048   ;;  %v266_v21 = vlaneseq  ;;  %s667_s2 = inlined_call_operand.vmem [shape: f32[16,128], index: 2, kind: input, shape index: {}]   ;;  %s668_s0 = inlined_call_operand.vmem [shape: f32[32,16], index: 0, kind: input, shape index: {}]   ;;  %s669_s1 = inlined_call_operand.vmem [shape: f32[64,16], index: 1, kind: input, shape index: {}]   ;;  %s670_s3 = inlined_call_operand.<no memory space> [shape: f32[1], index: 3, kind: input, shape index: {}]   ;;  %s671_s4 = inlined_call_operand.vmem [shape: f32[2,32,128], index: 4, kind: output, shape index: {}]  }
   0x1   :  { %v22_v0 = vld [vmem:[%s667_s2] sm:$0xff]  ;;  %v23_v1 = vld [vmem:[%s667_s2 + $0x8] sm:$0xff]  ;;  %v20_v4 = vld [vmem:[%s668_s0 + $0x10] sm:$0xff]  ;;  %v273_v31 = vstv %s670_s3 }
   0x2   :  { %v18_v2 = vld [vmem:[%s668_s0] sm:$0xff]  ;;  %v531_v3 = vpack.c.bf16 %v23_v1, %v22_v0  ;;  %496 = vmatprep.mubr.msk.f32.mxu1 %vm24_vm0, %v20_v4  ;;  %v19_v5 = vld [vmem:[%s668_s0 + $0x8] sm:$0xff]  ;;  %v21_v6 = vld [vmem:[%s668_s0 + $0x18] sm:$0xff]  ;;  %v267_v26 = vand.u32 127, %v266_v21 }
   0x3   :  { %493 = vmatprep.mubr.msk.f32.mxu0 %vm24_vm0, %v18_v2  ;;  %v127_v7 = vld [vmem:[%s669_s1] sm:$0xff]  ;;  %v128_v14 = vld [vmem:[%s669_s1 + $0x8] sm:$0xff]  ;;  %v129_v15 = vld [vmem:[%s669_s1 + $0x10] sm:$0xff] }
   0x4   :  { %532 = vmatprep.subr.bf16.mxu0 %v531_v3  ;;  %543 = vmatprep.subr.bf16.mxu1 %v531_v3  ;;  %v130_v16 = vld [vmem:[%s669_s1 + $0x18] sm:$0xff]  ;;  %v131_v17 = vld [vmem:[%s669_s1 + $0x20] sm:$0xff]  ;;  %v132_v18 = vld [vmem:[%s669_s1 + $0x28] sm:$0xff]  ;;  %vm268_vm1 = vcmp.lt.s32.totalorder %v267_v26, 64 }
   0x5   :  { %534 = vmatpush3.bf16.msra.mxu0 %v531_v3  ;;  %544 = vmatpush3.bf16.msra.mxu1 %v531_v3  ;;  %v133_v19 = vld [vmem:[%s669_s1 + $0x30] sm:$0xff]  ;;  %v134_v20 = vld [vmem:[%s669_s1 + $0x38] sm:$0xff] }
   0x8   :  { %494 = vmatmul.mubr.msk.f32.vlgmr.msra.gmra.mrb[0].mxu0 %vm24_vm0, %v19_v5  ;;  %497 = vmatmul.mubr.msk.f32.vlgmr.msra.gmra.mrb[0].mxu1 %vm24_vm0, %v21_v6 }
   0x9   :  { %503 = vmatprep.mubr.msk.f32.mxu1 %vm24_vm0, %v127_v7  ;;  %519 = vmatprep.mubr.msk.f32.mxu0 %vm24_vm0, %v127_v7 }
  0xdb   :  { %v495_v8 = vpop.f32.mrb[0].mxu0  ;;  %v498_v9 = vpop.f32.mrb[0].mxu1 }
  0xdc   :  { %v103_v10 = vpop.f32.mrb[1].mxu0  ;;  %v113_v11 = vpop.f32.mrb[1].mxu1 }
  0xdd   :  { %v535_v12 = vpack.c.bf16 %v495_v8, %v103_v10  ;;  %v539_v13 = vpack.c.bf16 %v498_v9, %v113_v11 }
  0xdf   :  { %536 = vmatprep.subr.bf16.mxu1 %v535_v12  ;;  %540 = vmatprep.subr.bf16.mxu0 %v539_v13 }
  0xe0   :  { %538 = vmatpush3.bf16.msra.mxu1 %v535_v12  ;;  %542 = vmatpush3.bf16.msra.mxu0 %v539_v13 }
  0xe3   :  { %504 = vmatmul.mubr.msk.f32.vlgmr.msra.gmra.mrb[2].mxu1 %vm24_vm0, %v128_v14  ;;  %520 = vmatmul.mubr.msk.f32.vlgmr.msra.gmra.mrb[2].mxu0 %vm24_vm0, %v128_v14 }
  0xe4   :  { %506 = vmatprep.mubr.msk.f32.mxu1 %vm24_vm0, %v129_v15  ;;  %522 = vmatprep.mubr.msk.f32.mxu0 %vm24_vm0, %v129_v15 }
  0xe7   :  { %507 = vmatmul.mubr.msk.f32.gmra.mrb[4].mxu1 %vm24_vm0, %v130_v16  ;;  %523 = vmatmul.mubr.msk.f32.gmra.mrb[4].mxu0 %vm24_vm0, %v130_v16 }
  0xe8   :  { %509 = vmatprep.mubr.msk.f32.mxu1 %vm24_vm0, %v131_v17  ;;  %525 = vmatprep.mubr.msk.f32.mxu0 %vm24_vm0, %v131_v17 }
  0xeb   :  { %510 = vmatmul.mubr.msk.f32.gmra.mrb[6].mxu1 %vm24_vm0, %v132_v18  ;;  %526 = vmatmul.mubr.msk.f32.gmra.mrb[6].mxu0 %vm24_vm0, %v132_v18 }
  0xec   :  { %512 = vmatprep.mubr.msk.f32.mxu1 %vm24_vm0, %v133_v19  ;;  %528 = vmatprep.mubr.msk.f32.mxu0 %vm24_vm0, %v133_v19 }
  0xef   :  { %513 = vmatmul.mubr.msk.f32.gmra.mrb[8].mxu1 %vm24_vm0, %v134_v20  ;;  %529 = vmatmul.mubr.msk.f32.gmra.mrb[8].mxu0 %vm24_vm0, %v134_v20 }
 0x1b6   :  { %v505_v22 = vpop.f32.mrb[2].mxu1  ;;  %v521_v23 = vpop.f32.mrb[2].mxu0 }
 0x1b7   :  { %v227_v24 = vpop.f32.mrb[3].mxu1  ;;  %v383_v25 = vpop.f32.mrb[3].mxu0 }
 0x1ba   :  { %v508_v27 = vpop.f32.mrb[4].mxu1  ;;  %v524_v28 = vpop.f32.mrb[4].mxu0 }
 0x1bb   :  { %v237_v29 = vpop.f32.mrb[5].mxu1  ;;  %v393_v30 = vpop.f32.mrb[5].mxu0 }
 0x1be   :  { %v511_v32 = vpop.f32.mrb[6].mxu1  ;;  %v527_v33 = vpop.f32.mrb[6].mxu0 }
 0x1bf   :  { %v270_v34 = vsel %vm268_vm1, %v505_v22, %v511_v32  ;;  %v423_v35 = vsel %vm268_vm1, %v521_v23, %v527_v33  ;;  %v247_v36 = vpop.f32.mrb[7].mxu1  ;;  %v403_v37 = vpop.f32.mrb[7].mxu0 }
 0x1c0   :  { %v275_v38 = vadd.f32 %v273_v31, %v270_v34  ;;  %v427_v39 = vadd.f32 %v423_v35, %v273_v31  ;;  %v269_v40 = vsel %vm268_vm1, %v227_v24, %v247_v36  ;;  %v422_v41 = vsel %vm268_vm1, %v383_v25, %v403_v37 }
 0x1c1   :  { %v274_v42 = vadd.f32 %v273_v31, %v269_v40  ;;  %v426_v43 = vadd.f32 %v422_v41, %v273_v31 }
 0x1c2   :  { %279 = vst [vmem:[%s671_s4 + $0x8] sm:$0xff] %v275_v38  ;;  %460 = vst [vmem:[%s671_s4 + $0x28] sm:$0xff] %v427_v39  ;;  %v514_v44 = vpop.f32.mrb[8].mxu1  ;;  %v530_v45 = vpop.f32.mrb[8].mxu0 }
 0x1c3   :  { %278 = vst [vmem:[%s671_s4] sm:$0xff] %v274_v42  ;;  %459 = vst [vmem:[%s671_s4 + $0x20] sm:$0xff] %v426_v43  ;;  %v272_v46 = vsel %vm268_vm1, %v508_v27, %v514_v44  ;;  %v425_v47 = vsel %vm268_vm1, %v524_v28, %v530_v45  ;;  %v257_v48 = vpop.f32.mrb[9].mxu1  ;;  %v413_v49 = vpop.f32.mrb[9].mxu0 }
 0x1c4   :  { %v277_v50 = vadd.f32 %v273_v31, %v272_v46  ;;  %v429_v51 = vadd.f32 %v425_v47, %v273_v31  ;;  %v271_v52 = vsel %vm268_vm1, %v237_v29, %v257_v48  ;;  %v424_v53 = vsel %vm268_vm1, %v393_v30, %v413_v49 }
 0x1c5   :  { %v276_v54 = vadd.f32 %v273_v31, %v271_v52  ;;  %v428_v55 = vadd.f32 %v424_v53, %v273_v31 }
 0x1c6   :  { %281 = vst [vmem:[%s671_s4 + $0x18] sm:$0xff] %v277_v50  ;;  %462 = vst [vmem:[%s671_s4 + $0x38] sm:$0xff] %v429_v51 }
 0x1c7   :  { %280 = vst [vmem:[%s671_s4 + $0x10] sm:$0xff] %v276_v54  ;;  %461 = vst [vmem:[%s671_s4 + $0x30] sm:$0xff] %v428_v55 }

</bundles_post_ra>
